<compile_context>
chip_gen: v7x
topology: tpu7x:2x2x1
jax: 0.10.0
libtpu: 0.0.40
codegen_flags: <defaults>
</compile_context>

<pallas_src>
import functools

import jax
import jax.numpy as jnp
from jax.experimental import pallas as pl
from jax.experimental.pallas import tpu as pltpu

_LANE = 128   # lane width: feature dims padded to a multiple of this
_SUBLANE = 8  # sublane width: batch dim padded to a multiple of this


def _round_up(n, m):
    return ((n + m - 1) // m) * m


def _pad2d(a, rows, cols):
    out = jnp.zeros((rows, cols), a.dtype)
    return out.at[: a.shape[0], : a.shape[1]].set(a)


def _fused_ae_kernel(*refs, num_layers):
    """refs = (x_ref, w0_ref, b0_ref, ..., w{L-1}_ref, b{L-1}_ref, o_ref).

    Whole network in one program: the activation stays resident on-chip
    between layers, matmuls run on the MXU in bf16 with f32 accumulation,
    and the sigmoid is a single EUP tanh per element.
    """
    x_ref = refs[0]
    o_ref = refs[1 + 2 * num_layers]

    h = x_ref[...].astype(jnp.float32)
    for i in range(num_layers):                 # static unroll over layers
        w = refs[1 + 2 * i][...]                # bf16 [in_pad, out_pad]
        b = refs[2 + 2 * i][...]                # f32  [1, out_pad] -> broadcasts
        y = jnp.dot(h.astype(w.dtype), w,
                    preferred_element_type=jnp.float32) + b
        # sigmoid(y) == 0.5 * (tanh(y/2) + 1): exact, one EUP op per element.
        h = 0.5 * (jnp.tanh(0.5 * y) + 1.0)
    o_ref[...] = h.astype(o_ref.dtype)


def prepare_params(params):
    """One-time prep (call OUTSIDE the hot path): pad to lane multiples, bf16 weights.

    params: tuple of (w_t[in_f, out_f] (== PyTorch W.T), b[1, out_f]) in f32.
    Padded regions are exactly zero (required for correctness, see header).
    """
    prepped = []
    for w_t, b in params:
        in_f, out_f = w_t.shape
        in_pad = _round_up(in_f, _LANE)
        out_pad = _round_up(out_f, _LANE)
        w_p = _pad2d(w_t, in_pad, out_pad).astype(jnp.bfloat16)
        b_p = _pad2d(b, 1, out_pad).astype(jnp.float32)
        prepped.append((w_p, b_p))
    return tuple(prepped)


@functools.partial(jax.jit, static_argnames=("out_features",))
def autoencoder_forward(x, padded_params, out_features):
    """Fused forward pass.

    x: [B, in_features] f32.
    padded_params: output of prepare_params() (already padded / bf16).
    out_features: logical output feature count (for slicing the padded result).
    """
    B, in_f = x.shape
    num_layers = len(padded_params)
    in_pad = padded_params[0][0].shape[0]
    out_pad = padded_params[-1][0].shape[1]

    # Batch (M) tiling: one tile at toy sizes, 128-row tiles for large B so the
    # "parallel" grid axis can shard across v7x's 2 TensorCores.
    if B <= _LANE:
        b_pad = _round_up(B, _SUBLANE)
        tm = b_pad
    else:
        tm = _LANE
        b_pad = _round_up(B, _LANE)
    grid = (b_pad // tm,)

    # Only the activation is padded per call (single pad op); params are
    # already padded once in prepare_params().
    x_p = _pad2d(x, b_pad, in_pad)

    flat_params = [p for pair in padded_params for p in pair]

    # Advisory cost estimate for XLA scheduling around the custom call.
    flops = 0
    transcendentals = 0
    bytes_accessed = (x_p.size * x_p.dtype.itemsize
                      + b_pad * out_pad * x.dtype.itemsize)
    for w_p, b_p in padded_params:
        flops += 2 * b_pad * w_p.shape[0] * w_p.shape[1]
        transcendentals += b_pad * w_p.shape[1]          # one tanh per element
        bytes_accessed += (w_p.size * w_p.dtype.itemsize
                           + b_p.size * b_p.dtype.itemsize)

    # Weights/biases: whole-array VMEM residents (no blocking machinery).
    vmem_full = pl.BlockSpec(memory_space=pltpu.MemorySpace.VMEM)

    out_padded = pl.pallas_call(
        functools.partial(_fused_ae_kernel, num_layers=num_layers),
        out_shape=jax.ShapeDtypeStruct((b_pad, out_pad), x.dtype),
        grid=grid,
        in_specs=[pl.BlockSpec((tm, in_pad), lambda i: (i, 0))]
        + [vmem_full] * len(flat_params),
        out_specs=pl.BlockSpec((tm, out_pad), lambda i: (i, 0)),
        compiler_params=pltpu.CompilerParams(
            dimension_semantics=("parallel",)),
        cost_estimate=pl.CostEstimate(
            flops=flops,
            transcendentals=transcendentals,
            bytes_accessed=bytes_accessed),
    )(x_p, *flat_params)

    return out_padded[:B, :out_features]


def init_autoencoder_params(key, num_layers, layer_size, input_size, output_size,
                            dtype=jnp.float32):
    """Deterministic PyTorch-style init: U(-1/sqrt(fan_in), 1/sqrt(fan_in))."""
    params = []
    for i in range(num_layers):
        in_f = input_size if i == 0 else layer_size
        out_f = output_size if i == num_layers - 1 else layer_size
        key, kw, kb = jax.random.split(key, 3)
        bound = 1.0 / jnp.sqrt(jnp.asarray(in_f, dtype))
        # Store the weight already transposed: [in_f, out_f] == W.T
        w_t = jax.random.uniform(kw, (in_f, out_f), dtype, -bound, bound)
        b = jax.random.uniform(kb, (1, out_f), dtype, -bound, bound)
        params.append((w_t, b))
    return tuple(params)


def autoencoder_forward_ref(x, params):
    """Pure-JAX f32 reference matching the PyTorch module semantics."""
    for w_t, b in params:
        x = jax.nn.sigmoid(x @ w_t + b)
    return x


if __name__ == "__main__":
    num_layers = 3
    input_size = 32
    layer_size = 32
    output_size = 16
    batch = 8

    key = jax.random.PRNGKey(0)
    key, kx = jax.random.split(key)
    x = jax.random.normal(kx, (batch, input_size), jnp.float32)
    params = init_autoencoder_params(key, num_layers, layer_size,
                                     input_size, output_size)

    # One-time parameter prep (padding + bf16 cast) outside the hot path.
    padded_params = prepare_params(params)
    padded_params = jax.block_until_ready(padded_params)

    out = autoencoder_forward(x, padded_params, output_size)
    out = jax.block_until_ready(out)

    ref = autoencoder_forward_ref(x, params)
    assert out.shape == (batch, output_size), out.shape
    # bf16 matmul inputs (f32 accumulation) -> small tolerance vs f32 reference.
    max_err = float(jnp.max(jnp.abs(out - ref)))
    assert jnp.allclose(out, ref, atol=1e-2, rtol=1e-2), max_err
    print("KERNEL_OK")
</pallas_src>

<mosaic_0001>
module attributes {stable_mosaic.version = 11 : i64} {
  func.func @_fused_ae_kernel(%arg0: i32, %arg1: memref<8x128xf32, #tpu.memory_space<vmem>>, %arg2: memref<128x128xbf16, #tpu.memory_space<vmem>>, %arg3: memref<1x128xf32, #tpu.memory_space<vmem>>, %arg4: memref<128x128xbf16, #tpu.memory_space<vmem>>, %arg5: memref<1x128xf32, #tpu.memory_space<vmem>>, %arg6: memref<128x128xbf16, #tpu.memory_space<vmem>>, %arg7: memref<1x128xf32, #tpu.memory_space<vmem>>, %arg8: memref<8x128xf32, #tpu.memory_space<vmem>>) attributes {dimension_semantics = [#tpu.dimension_semantics<parallel>], iteration_bounds = array<i64: 1>, scalar_prefetch = 0 : i64, scratch_operands = 0 : i64, tpu.core_type = #tpu.core_type<tc>, window_params = [{transform_indices = @transform_0, window_bounds = array<i64: 8, 128>}, {pipeline_mode = #tpu.pipeline_mode<synchronous>, transform_indices = @transform_1, window_bounds = array<i64: 128, 128>}, {pipeline_mode = #tpu.pipeline_mode<synchronous>, transform_indices = @transform_2, window_bounds = array<i64: 1, 128>}, {pipeline_mode = #tpu.pipeline_mode<synchronous>, transform_indices = @transform_3, window_bounds = array<i64: 128, 128>}, {pipeline_mode = #tpu.pipeline_mode<synchronous>, transform_indices = @transform_4, window_bounds = array<i64: 1, 128>}, {pipeline_mode = #tpu.pipeline_mode<synchronous>, transform_indices = @transform_5, window_bounds = array<i64: 128, 128>}, {pipeline_mode = #tpu.pipeline_mode<synchronous>, transform_indices = @transform_6, window_bounds = array<i64: 1, 128>}, {transform_indices = @transform_7, window_bounds = array<i64: 8, 128>}]} {
    %c0 = arith.constant 0 : index
    %c0_0 = arith.constant 0 : index
    %0 = vector.load %arg1[%c0, %c0_0] : memref<8x128xf32, #tpu.memory_space<vmem>>, vector<8x128xf32>
    %c0_1 = arith.constant 0 : index
    %c0_2 = arith.constant 0 : index
    %1 = vector.load %arg2[%c0_1, %c0_2] : memref<128x128xbf16, #tpu.memory_space<vmem>>, vector<128x128xbf16>
    %c0_3 = arith.constant 0 : index
    %c0_4 = arith.constant 0 : index
    %2 = vector.load %arg3[%c0_3, %c0_4] : memref<1x128xf32, #tpu.memory_space<vmem>>, vector<1x128xf32>
    %3 = arith.truncf %0 : vector<8x128xf32> to vector<8x128xbf16>
    %cst = arith.constant dense<0.000000e+00> : vector<8x128xf32>
    %4 = tpu.matmul %3, %1, %cst {dimension_numbers = #tpu.dot_dimension_numbers<[1], [0], [0], [1], [0, 0, 1, 1], [], []>} : vector<8x128xbf16>, vector<128x128xbf16>, vector<8x128xf32> -> vector<8x128xf32>
    %5 = vector.broadcast %2 : vector<1x128xf32> to vector<8x128xf32>
    %6 = arith.addf %4, %5 : vector<8x128xf32>
    %cst_5 = arith.constant 5.000000e-01 : f32
    %7 = vector.broadcast %cst_5 : f32 to vector<8x128xf32>
    %8 = arith.mulf %7, %6 : vector<8x128xf32>
    %9 = math.tanh %8 : vector<8x128xf32>
    %cst_6 = arith.constant 1.000000e+00 : f32
    %10 = vector.broadcast %cst_6 : f32 to vector<8x128xf32>
    %11 = arith.addf %9, %10 : vector<8x128xf32>
    %cst_7 = arith.constant 5.000000e-01 : f32
    %12 = vector.broadcast %cst_7 : f32 to vector<8x128xf32>
    %13 = arith.mulf %12, %11 : vector<8x128xf32>
    %c0_8 = arith.constant 0 : index
    %c0_9 = arith.constant 0 : index
    %14 = vector.load %arg4[%c0_8, %c0_9] : memref<128x128xbf16, #tpu.memory_space<vmem>>, vector<128x128xbf16>
    %c0_10 = arith.constant 0 : index
    %c0_11 = arith.constant 0 : index
    %15 = vector.load %arg5[%c0_10, %c0_11] : memref<1x128xf32, #tpu.memory_space<vmem>>, vector<1x128xf32>
    %16 = arith.truncf %13 : vector<8x128xf32> to vector<8x128xbf16>
    %cst_12 = arith.constant dense<0.000000e+00> : vector<8x128xf32>
    %17 = tpu.matmul %16, %14, %cst_12 {dimension_numbers = #tpu.dot_dimension_numbers<[1], [0], [0], [1], [0, 0, 1, 1], [], []>} : vector<8x128xbf16>, vector<128x128xbf16>, vector<8x128xf32> -> vector<8x128xf32>
    %18 = vector.broadcast %15 : vector<1x128xf32> to vector<8x128xf32>
    %19 = arith.addf %17, %18 : vector<8x128xf32>
    %cst_13 = arith.constant 5.000000e-01 : f32
    %20 = vector.broadcast %cst_13 : f32 to vector<8x128xf32>
    %21 = arith.mulf %20, %19 : vector<8x128xf32>
    %22 = math.tanh %21 : vector<8x128xf32>
    %cst_14 = arith.constant 1.000000e+00 : f32
    %23 = vector.broadcast %cst_14 : f32 to vector<8x128xf32>
    %24 = arith.addf %22, %23 : vector<8x128xf32>
    %cst_15 = arith.constant 5.000000e-01 : f32
    %25 = vector.broadcast %cst_15 : f32 to vector<8x128xf32>
    %26 = arith.mulf %25, %24 : vector<8x128xf32>
    %c0_16 = arith.constant 0 : index
    %c0_17 = arith.constant 0 : index
    %27 = vector.load %arg6[%c0_16, %c0_17] : memref<128x128xbf16, #tpu.memory_space<vmem>>, vector<128x128xbf16>
    %c0_18 = arith.constant 0 : index
    %c0_19 = arith.constant 0 : index
    %28 = vector.load %arg7[%c0_18, %c0_19] : memref<1x128xf32, #tpu.memory_space<vmem>>, vector<1x128xf32>
    %29 = arith.truncf %26 : vector<8x128xf32> to vector<8x128xbf16>
    %cst_20 = arith.constant dense<0.000000e+00> : vector<8x128xf32>
    %30 = tpu.matmul %29, %27, %cst_20 {dimension_numbers = #tpu.dot_dimension_numbers<[1], [0], [0], [1], [0, 0, 1, 1], [], []>} : vector<8x128xbf16>, vector<128x128xbf16>, vector<8x128xf32> -> vector<8x128xf32>
    %31 = vector.broadcast %28 : vector<1x128xf32> to vector<8x128xf32>
    %32 = arith.addf %30, %31 : vector<8x128xf32>
    %cst_21 = arith.constant 5.000000e-01 : f32
    %33 = vector.broadcast %cst_21 : f32 to vector<8x128xf32>
    %34 = arith.mulf %33, %32 : vector<8x128xf32>
    %35 = math.tanh %34 : vector<8x128xf32>
    %cst_22 = arith.constant 1.000000e+00 : f32
    %36 = vector.broadcast %cst_22 : f32 to vector<8x128xf32>
    %37 = arith.addf %35, %36 : vector<8x128xf32>
    %cst_23 = arith.constant 5.000000e-01 : f32
    %38 = vector.broadcast %cst_23 : f32 to vector<8x128xf32>
    %39 = arith.mulf %38, %37 : vector<8x128xf32>
    %c0_24 = arith.constant 0 : index
    %c0_25 = arith.constant 0 : index
    %40 = vector.load %arg8[%c0_24, %c0_25] : memref<8x128xf32, #tpu.memory_space<vmem>>, vector<8x128xf32>
    tpu.vector_store %arg8[%c0_24, %c0_25], %39 {strides = array<i32>} : memref<8x128xf32, #tpu.memory_space<vmem>>, vector<8x128xf32>,
    return
  }
  func.func @transform_0(%arg0: i32) -> (i32, i32) {
    %c0_i32 = arith.constant 0 : i32
    %c0_i32_0 = arith.constant 0 : i32
    return %arg0, %c0_i32 : i32, i32
  }
  func.func @transform_1(%arg0: i32) -> (i32, i32) {
    %c0_i32 = arith.constant 0 : i32
    %c0_i32_0 = arith.constant 0 : i32
    %c0_i32_1 = arith.constant 0 : i32
    return %c0_i32, %c0_i32_0 : i32, i32
  }
  func.func @transform_2(%arg0: i32) -> (i32, i32) {
    %c0_i32 = arith.constant 0 : i32
    %c0_i32_0 = arith.constant 0 : i32
    %c0_i32_1 = arith.constant 0 : i32
    return %c0_i32, %c0_i32_0 : i32, i32
  }
  func.func @transform_3(%arg0: i32) -> (i32, i32) {
    %c0_i32 = arith.constant 0 : i32
    %c0_i32_0 = arith.constant 0 : i32
    %c0_i32_1 = arith.constant 0 : i32
    return %c0_i32, %c0_i32_0 : i32, i32
  }
  func.func @transform_4(%arg0: i32) -> (i32, i32) {
    %c0_i32 = arith.constant 0 : i32
    %c0_i32_0 = arith.constant 0 : i32
    %c0_i32_1 = arith.constant 0 : i32
    return %c0_i32, %c0_i32_0 : i32, i32
  }
  func.func @transform_5(%arg0: i32) -> (i32, i32) {
    %c0_i32 = arith.constant 0 : i32
    %c0_i32_0 = arith.constant 0 : i32
    %c0_i32_1 = arith.constant 0 : i32
    return %c0_i32, %c0_i32_0 : i32, i32
  }
  func.func @transform_6(%arg0: i32) -> (i32, i32) {
    %c0_i32 = arith.constant 0 : i32
    %c0_i32_0 = arith.constant 0 : i32
    %c0_i32_1 = arith.constant 0 : i32
    return %c0_i32, %c0_i32_0 : i32, i32
  }
  func.func @transform_7(%arg0: i32) -> (i32, i32) {
    %c0_i32 = arith.constant 0 : i32
    %c0_i32_0 = arith.constant 0 : i32
    return %arg0, %c0_i32 : i32, i32
  }
}

</mosaic_0001>

<bundles_post_ra>
// kernel: autoencoder_forward.1
= control target key start
LH: loop header
LB: loop body
LE: loop exit
PB: predicated region body
PF: predicated region fallthrough
CT: control target
= control target key end

     0   :  { %12 = vsyncpa [#allocation3], 0  ;;  %s835_s0 = inlined_call_operand.vmem [shape: f32[8,128], index: 0, kind: input, shape index: {}]   ;;  %s836_s1 = inlined_call_operand.hbm [shape: bf16[128,128], index: 1, kind: input, shape index: {}]   ;;  %s837_s2 = inlined_call_operand.vmem [shape: f32[1,128], index: 2, kind: input, shape index: {}]   ;;  %s838_s3 = inlined_call_operand.hbm [shape: bf16[128,128], index: 3, kind: input, shape index: {}]   ;;  %s839_s4 = inlined_call_operand.vmem [shape: f32[1,128], index: 4, kind: input, shape index: {}]   ;;  %s840_s5 = inlined_call_operand.hbm [shape: bf16[128,128], index: 5, kind: input, shape index: {}]   ;;  %s841_s6 = inlined_call_operand.vmem [shape: f32[1,128], index: 6, kind: input, shape index: {}]   ;;  %s842_s7 = inlined_call_operand.hbm [shape: f32[8,128], index: 7, kind: output, shape index: {}]  }
   0x1   :  { %13 = vsyncpa [#allocation6], 0 }
   0x2   :  { %14 = vsyncpa [#allocation4], 0  ;;  %s681_s24 = smov [#allocation5]   ;;  %s682_s26 = smov [#allocation2]  }
   0x3   :  { %s36_s25 = sshll.u32 %s681_s24, 4  ;;  %s22_s27 = sshll.u32 %s682_s26, 4  ;;  %s37_s25 = int_to_ptr.vmem [resolvable:$true] %s36_s25  ;;  %s729_s27 = int_to_ptr.vmem [resolvable:$true] %s22_s27 }
   0x4   :  { %s587_s30 = scalar_lea.hbm %s838_s3, 1024 }
   0x5   :  { %p588_p0 = scmp.ne.s32.totalorder %s838_s3, %s587_s30  ;;  %p591_p1 = scmp.lt.u32.totalorder %s587_s30, %s838_s3 }
   0x7   :  { %p593_p2 = pnand %p591_p1, %p588_p0 }
   0x9   :  { %596 = shalt.err (!%p593_p2)
}
   0xa   :  { %s597_s12 = scalar_lea.vmem %s37_s25, 1024  ;;  %p602_p4 = scmp.lt.s32.totalorder %s37_s25, %s37_s25 }
   0xb   :  { %p598_p3 = scmp.ne.s32.totalorder %s37_s25, %s597_s12  ;;  %p603_p5 = scmp.lt.s32.totalorder %s597_s12, %s597_s12 }
   0xd   :  { %p604_p6 = por %p603_p5, %p602_p4 }
   0xf   :  { %p605_p7 = pnand %p604_p6, %p598_p3 }
  0x11   :  { %608 = shalt.err (!%p605_p7)
}
  0x12   :  { %s683_s13 = smov 64   ;;  %s684_s14 = smov 4  }
  0x13   :  { %42 = dma.hbm_to_vmem [thread:$0]  %s838_s3, 1024, %s37_s25, [#allocation6], %s683_s13, %s683_s13, %s684_s14  }
  0x14   :  { %s609_s19 = scalar_lea.hbm %s836_s1, 1024 }
  0x15   :  { %p610_p8 = scmp.ne.s32.totalorder %s836_s1, %s609_s19  ;;  %p613_p9 = scmp.lt.u32.totalorder %s609_s19, %s836_s1 }
  0x17   :  { %p615_p10 = pnand %p613_p9, %p610_p8 }
  0x19   :  { %618 = shalt.err (!%p615_p10)
}
  0x1a   :  { %s619_s24 = scalar_lea.vmem %s729_s27, 1024  ;;  %p624_p12 = scmp.lt.s32.totalorder %s729_s27, %s729_s27 }
  0x1b   :  { %p620_p11 = scmp.ne.s32.totalorder %s729_s27, %s619_s24  ;;  %p625_p13 = scmp.lt.s32.totalorder %s619_s24, %s619_s24 }
  0x1d   :  { %p626_p0 = por %p625_p13, %p624_p12 }
  0x1f   :  { %p627_p1 = pnand %p626_p0, %p620_p11 }
  0x21   :  { %630 = shalt.err (!%p627_p1)
}
  0x22   :  { %28 = dma.hbm_to_vmem [thread:$0]  %s836_s1, 1024, %s729_s27, [#allocation3], %s683_s13, %s683_s13, %s684_s14  }
  0x23   :  { %s685_s26 = smov [#allocation7]   ;;  %s631_s8 = scalar_lea.hbm %s840_s5, 1024 }
  0x24   :  { %s50_s28 = sshll.u32 %s685_s26, 4  ;;  %p632_p2 = scmp.ne.s32.totalorder %s840_s5, %s631_s8  ;;  %s51_s28 = int_to_ptr.vmem [resolvable:$true] %s50_s28 }
  0x25   :  { %p635_p3 = scmp.lt.u32.totalorder %s631_s8, %s840_s5 }
  0x27   :  { %p637_p4 = pnand %p635_p3, %p632_p2 }
  0x29   :  { %640 = shalt.err (!%p637_p4)
}
  0x2a   :  { %s641_s15 = scalar_lea.vmem %s51_s28, 1024  ;;  %p646_p6 = scmp.lt.s32.totalorder %s51_s28, %s51_s28 }
  0x2b   :  { %p642_p5 = scmp.ne.s32.totalorder %s51_s28, %s641_s15  ;;  %p647_p7 = scmp.lt.s32.totalorder %s641_s15, %s641_s15 }
  0x2d   :  { %p648_p8 = por %p647_p7, %p646_p6 }
  0x2f   :  { %p649_p9 = pnand %p648_p8, %p642_p5 }
  0x31   :  { %652 = shalt.err (!%p649_p9)
}
  0x32   :  { %56 = dma.hbm_to_vmem [thread:$0]  %s840_s5, 1024, %s51_s28, [#allocation6], %s683_s13, %s683_s13, %s684_s14  }
  0x33   :  { %675 = dma.done.wait [#allocation3], 1024  }
  0x34   :  { %676 = vsyncadd [#allocation3], 4294966272 }
  0x35   :  { %677 = dma.done.wait [#allocation6], 2048  }
  0x36   :  { %678 = vsyncadd [#allocation6], 4294965248  ;;  %v686_v0 = vmov 0.0   ;;  %vm687_vm0 = vmmov 0   ;;  %v557_v1 = vld [vmem:[#allocation2] sm:$0xff]   ;;  %v558_v2 = vld [vmem:[#allocation2 + $0x8] sm:$0xff]  }
  0x37   :  { %489 = vmatprep.subr.bf16.mxu0 %v686_v0  ;;  %505 = vmatprep.mubr.msk.bf16.mxu0 %vm687_vm0, %v686_v0  ;;  %v559_v3 = vld [vmem:[#allocation2 + $0x10] sm:$0xff]   ;;  %v565_v4 = vld [vmem:[#allocation5] sm:$0xff]   ;;  %v560_v5 = vld [vmem:[#allocation2 + $0x18] sm:$0xff]  }
  0x38   :  { %509 = vmatprep.subr.bf16.mxu1 %v686_v0  ;;  %525 = vmatprep.mubr.msk.bf16.mxu1 %vm687_vm0, %v686_v0  ;;  %v566_v6 = vld [vmem:[#allocation5 + $0x8] sm:$0xff]   ;;  %v561_v7 = vld [vmem:[#allocation2 + $0x20] sm:$0xff]   ;;  %v567_v8 = vld [vmem:[#allocation5 + $0x10] sm:$0xff]  }
  0x39   :  { %490 = vmatpush3.bf16.msra.mxu0 %v557_v1  ;;  %510 = vmatpush3.bf16.msra.mxu1 %v565_v4  ;;  %v562_v9 = vld [vmem:[#allocation2 + $0x28] sm:$0xff]   ;;  %v563_v10 = vld [vmem:[#allocation2 + $0x30] sm:$0xff]   ;;  %v564_v11 = vld [vmem:[#allocation2 + $0x38] sm:$0xff]  }
  0x3a   :  { %491 = vmatprep.subr.bf16.mxu0 %v686_v0  ;;  %511 = vmatprep.subr.bf16.mxu1 %v686_v0  ;;  %v69_v12 = vld [vmem:[%s835_s0] sm:$0xff]  ;;  %v568_v14 = vld [vmem:[#allocation5 + $0x18] sm:$0xff]   ;;  %v570_v16 = vld [vmem:[#allocation5 + $0x28] sm:$0xff]  }
  0x3b   :  { %v87_v13 = vpack.c.bf16 %v69_v12, %v69_v12  ;;  %v569_v15 = vld [vmem:[#allocation5 + $0x20] sm:$0xff]   ;;  %v571_v17 = vld [vmem:[#allocation5 + $0x30] sm:$0xff]   ;;  %v572_v18 = vld [vmem:[#allocation5 + $0x38] sm:$0xff]  }
  0x3c   :  { %v573_v19 = vld [vmem:[#allocation7] sm:$0xff]   ;;  %v574_v20 = vld [vmem:[#allocation7 + $0x8] sm:$0xff]   ;;  %v575_v21 = vld [vmem:[#allocation7 + $0x10] sm:$0xff]  }
  0x3d   :  { %492 = vmatpush3.bf16.msra.mxu0 %v558_v2  ;;  %512 = vmatpush3.bf16.msra.mxu1 %v566_v6  ;;  %v435_v22 = vld [vmem:[%s837_s2] ss:$0 sm:$0xff]  ;;  %v576_v33 = vld [vmem:[#allocation7 + $0x18] sm:$0xff]   ;;  %v578_v35 = vld [vmem:[#allocation7 + $0x28] sm:$0xff]  }
  0x3e   :  { %493 = vmatprep.subr.bf16.mxu0 %v686_v0  ;;  %513 = vmatprep.subr.bf16.mxu1 %v686_v0  ;;  %v577_v34 = vld [vmem:[#allocation7 + $0x20] sm:$0xff]   ;;  %v579_v36 = vld [vmem:[#allocation7 + $0x30] sm:$0xff]   ;;  %v580_v37 = vld [vmem:[#allocation7 + $0x38] sm:$0xff]  }
  0x3f   :  { %v444_v38 = vld [vmem:[%s839_s4] ss:$0 sm:$0xff]  ;;  %s688_s4 = smov [#allocation8]  }
  0x40   :  { %v453_v49 = vld [vmem:[%s841_s6] ss:$0 sm:$0xff]  ;;  %s425_s19 = sshll.u32 %s688_s4, 4  ;;  %s426_s19 = int_to_ptr.vmem [resolvable:$true] %s425_s19 }
  0x41   :  { %494 = vmatpush3.bf16.msra.mxu0 %v559_v3  ;;  %514 = vmatpush3.bf16.msra.mxu1 %v567_v8  ;;  %s653_s20 = scalar_lea.vmem %s426_s19, 128  ;;  %p658_p11 = scmp.lt.s32.totalorder %s426_s19, %s426_s19 }
  0x42   :  { %495 = vmatprep.subr.bf16.mxu0 %v686_v0  ;;  %515 = vmatprep.subr.bf16.mxu1 %v686_v0  ;;  %p654_p10 = scmp.ne.s32.totalorder %s426_s19, %s653_s20  ;;  %p659_p12 = scmp.lt.s32.totalorder %s653_s20, %s653_s20 }
  0x44   :  { %p660_p13 = por %p659_p12, %p658_p11 }
  0x45   :  { %496 = vmatpush3.bf16.msra.mxu0 %v560_v5  ;;  %516 = vmatpush3.bf16.msra.mxu1 %v568_v14 }
  0x46   :  { %497 = vmatprep.subr.bf16.mxu0 %v686_v0  ;;  %517 = vmatprep.subr.bf16.mxu1 %v686_v0  ;;  %p661_p0 = pnand %p660_p13, %p654_p10 }
  0x49   :  { %498 = vmatpush3.bf16.msra.mxu0 %v561_v7  ;;  %518 = vmatpush3.bf16.msra.mxu1 %v569_v15 }
  0x4a   :  { %499 = vmatprep.subr.bf16.mxu0 %v686_v0  ;;  %519 = vmatprep.subr.bf16.mxu1 %v686_v0 }
  0x4d   :  { %500 = vmatpush3.bf16.msra.mxu0 %v562_v9  ;;  %520 = vmatpush3.bf16.msra.mxu1 %v570_v16 }
  0x4e   :  { %501 = vmatprep.subr.bf16.mxu0 %v686_v0  ;;  %521 = vmatprep.subr.bf16.mxu1 %v686_v0 }
  0x51   :  { %502 = vmatpush3.bf16.msra.mxu0 %v563_v10  ;;  %522 = vmatpush3.bf16.msra.mxu1 %v571_v17 }
  0x52   :  { %503 = vmatprep.subr.bf16.mxu0 %v686_v0  ;;  %523 = vmatprep.subr.bf16.mxu1 %v686_v0 }
  0x55   :  { %504 = vmatpush3.bf16.msra.mxu0 %v564_v11  ;;  %524 = vmatpush3.bf16.msra.mxu1 %v572_v18 }
  0x56   :  { %529 = vmatprep.subr.bf16.mxu0 %v686_v0 }
  0x58   :  { %506 = vmatmul.mubr.bf16.vlgmr.msra.gmra.mrb[0].mxu0 %v87_v13 }
  0x59   :  { %545 = vmatprep.mubr.msk.bf16.mxu0 %vm687_vm0, %v686_v0  ;;  %530 = vmatpush3.bf16.msra.mxu0 %v573_v19 }
  0x5a   :  { %531 = vmatprep.subr.bf16.mxu0 %v686_v0 }
  0x5d   :  { %532 = vmatpush3.bf16.msra.mxu0 %v574_v20 }
  0x5e   :  { %533 = vmatprep.subr.bf16.mxu0 %v686_v0 }
  0x61   :  { %534 = vmatpush3.bf16.msra.mxu0 %v575_v21 }
  0x62   :  { %535 = vmatprep.subr.bf16.mxu0 %v686_v0 }
  0x65   :  { %536 = vmatpush3.bf16.msra.mxu0 %v576_v33 }
  0x66   :  { %537 = vmatprep.subr.bf16.mxu0 %v686_v0 }
  0x69   :  { %538 = vmatpush3.bf16.msra.mxu0 %v577_v34 }
  0x6a   :  { %539 = vmatprep.subr.bf16.mxu0 %v686_v0 }
  0x6d   :  { %540 = vmatpush3.bf16.msra.mxu0 %v578_v35 }
  0x6e   :  { %541 = vmatprep.subr.bf16.mxu0 %v686_v0 }
  0x71   :  { %542 = vmatpush3.bf16.msra.mxu0 %v579_v36 }
  0x72   :  { %543 = vmatprep.subr.bf16.mxu0 %v686_v0 }
  0x75   :  { %544 = vmatpush3.bf16.msra.mxu0 %v580_v37 }
 0x12b   :  { %v176_v23 = vpop.f32.mrb[0].mxu0 }
 0x12c   :  { %v177_v24 = vadd.f32 %v435_v22, %v176_v23  ;;  %v507_v25 = vpop.f32.mrb[1].mxu0 }
 0x12d   :  { %v179_v26 = vpop.f32.mrb[2].mxu0 }
 0x12e   :  { %v182_v27 = vmul.f32 0.5, %v177_v24  ;;  %v508_v28 = vpop.f32.mrb[3].mxu0 }
 0x130   :  { %581 = vtanh.f32 %v182_v27 }
 0x13a   :  { %v582_v29 = vpop.eup %581 }
 0x13b   :  { %v184_v30 = vadd.f32 1.0, %v582_v29 }
 0x13d   :  { %v185_v31 = vmul.f32 0.5, %v184_v30 }
 0x13f   :  { %v203_v32 = vpack.c.bf16 %v185_v31, %v185_v31 }
 0x141   :  { %526 = vmatmul.mubr.bf16.vlgmr.msra.gmra.mrb[0].mxu1 %v203_v32 }
 0x214   :  { %v292_v39 = vpop.f32.mrb[0].mxu1 }
 0x215   :  { %v293_v40 = vadd.f32 %v444_v38, %v292_v39  ;;  %v527_v41 = vpop.f32.mrb[1].mxu1 }
 0x216   :  { %v295_v42 = vpop.f32.mrb[2].mxu1 }
 0x217   :  { %v298_v43 = vmul.f32 0.5, %v293_v40  ;;  %v528_v44 = vpop.f32.mrb[3].mxu1 }
 0x219   :  { %583 = vtanh.f32 %v298_v43 }
 0x223   :  { %v584_v45 = vpop.eup %583 }
 0x224   :  { %v300_v46 = vadd.f32 1.0, %v584_v45 }
 0x226   :  { %v301_v47 = vmul.f32 0.5, %v300_v46 }
 0x228   :  { %v319_v48 = vpack.c.bf16 %v301_v47, %v301_v47 }
 0x22a   :  { %546 = vmatmul.mubr.bf16.vlgmr.msra.gmra.mrb[4].mxu0 %v319_v48 }
 0x2fd   :  { %v408_v50 = vpop.f32.mrb[4].mxu0 }
 0x2fe   :  { %v409_v51 = vadd.f32 %v453_v49, %v408_v50  ;;  %v547_v52 = vpop.f32.mrb[5].mxu0 }
 0x2ff   :  { %v411_v53 = vpop.f32.mrb[6].mxu0 }
 0x300   :  { %v414_v54 = vmul.f32 0.5, %v409_v51  ;;  %v548_v55 = vpop.f32.mrb[7].mxu0 }
 0x302   :  { %585 = vtanh.f32 %v414_v54 }
 0x30c   :  { %v586_v56 = vpop.eup %585 }
 0x30d   :  { %v416_v57 = vadd.f32 1.0, %v586_v56 }
 0x30f   :  { %v417_v58 = vmul.f32 0.5, %v416_v57 }
 0x311   :  { %418 = vst [vmem:[#allocation8] sm:$0xff] %v417_v58 }
 0x312   :  { %664 = shalt.err (!%p661_p0)
}
 0x313   :  { %s665_s22 = scalar_lea.hbm %s842_s7, 128 }
 0x314   :  { %p666_p1 = scmp.ne.s32.totalorder %s842_s7, %s665_s22  ;;  %p669_p2 = scmp.lt.u32.totalorder %s665_s22, %s842_s7 }
 0x316   :  { %p671_p3 = pnand %p669_p2, %p666_p1 }
 0x318   :  { %674 = shalt.err (!%p671_p3)
}
 0x319   :  { %428 = dma.vmem_to_hbm [thread:$0]  %s426_s19, 128, %s842_s7, [#allocation4]  }
 0x31a   :  { %679 = dma.done.wait [#allocation4], 128  }
 0x31b   :  { %680 = vsyncadd [#allocation4], 4294967168 }
 0x31c   :  { %432 = vsyncpa [#allocation3], 1 }
 0x31d   :  { %433 = vsyncpa [#allocation6], 1 }
 0x31e   :  { %434 = vsyncpa [#allocation4], 1 }

</bundles_post_ra>
